<compile_context>
chip_gen: v6e
topology: v6e:2x2x1
jax: 0.10.0
libtpu: 0.0.40
codegen_flags: <defaults>
</compile_context>

<pallas_src>
import math
import numpy as np
import jax
import jax.numpy as jnp
from jax.experimental import pallas as pl
from jax.experimental.pallas import tpu as pltpu


_MEAN_RGB = np.array([0.485, 0.456, 0.406], dtype=np.float32)
_STD_RGB = np.array([0.229, 0.224, 0.225], dtype=np.float32)


def _round_up(x: int, m: int) -> int:
    return ((x + m - 1) // m) * m


def _bicubic_matrix(in_size: int, out_size: int, A: float = -0.75) -> np.ndarray:
    """Row-interpolation matrix matching torch F.interpolate bicubic,
    align_corners=False, antialias=False (A=-0.75, replicate-padded taps)."""
    def cub1(x):  # |x| <= 1
        return ((A + 2.0) * x - (A + 3.0)) * x * x + 1.0

    def cub2(x):  # 1 < |x| < 2
        return ((A * x - 5.0 * A) * x + 8.0 * A) * x - 4.0 * A

    scale = in_size / out_size
    W = np.zeros((out_size, in_size), dtype=np.float64)
    for o in range(out_size):
        src = (o + 0.5) * scale - 0.5          # cubic path: no clamp of src
        f = math.floor(src)
        t = src - f
        ws = (cub2(t + 1.0), cub1(t), cub1(1.0 - t), cub2(2.0 - t))
        for k in range(4):
            idx = min(max(f - 1 + k, 0), in_size - 1)   # replicate-pad (bounded access)
            W[o, idx] += ws[k]
    return W.astype(np.float32)


def _pick_row_tiling(target_h: int, row_block: int):
    """Return (bt, n_outer, n_inner): output rows are tiled in blocks of bt and the grid
    is (n_outer, n_inner), tile index t = i*n_inner + j.  n_outer == 2 whenever the tile
    count can be made even (balanced v7x megacore split).  Guarantees no fully empty
    tile: (n_outer*n_inner - 1)*bt < target_h."""
    row_block = max(8, (row_block // 8) * 8)
    if target_h <= row_block:
        if target_h % 16 == 0 and target_h >= 32:
            return target_h // 2, 2, 1         # even 2-way split, 8-aligned halves
        return target_h, 1, 1                  # single tile (block == full dim, legal)
    n = -(-target_h // row_block)              # ceil
    if n % 2:
        n += 1                                 # even count for the 2-core split
    bt = _round_up(-(-target_h // n), 8)
    n = -(-target_h // bt)                     # actual tile count for this bt
    if n % 2 == 0:
        return bt, 2, n // 2
    return bt, 1, n                            # odd count: fall back to one parallel group


def _make_preproc_kernel(src_h: int, wpad: int, n_channels: int,
                         cast_chunk: int, scale, bias):
    """Kernel closure; all shape parameters and normalize constants are static."""

    def kernel(x_hbm, wwt_hbm, wh_ref, o_ref, img_f32, wwt_vmem, byte_buf, sems):
        # x_hbm   : (H, C*Wpad) int8 view of the uint8 image in HBM, slabs [B | G | R] on lanes
        # wwt_hbm : (Wpad, tWpad) f32 horizontal bicubic (transposed, zero-padded) in HBM
        # wh_ref  : (bt, H)    f32 vertical bicubic rows for this output-row tile (1/255 folded)
        # o_ref   : (C, bt, tWpad)
        # img_f32 : (H, C*Wpad) persistent widened image          (scratch, single copy)
        # wwt_vmem: (Wpad, tWpad) resident horizontal weights     (scratch, single copy)
        # byte_buf: (H, C*Wpad) int8 DMA landing buffer           (scratch, single copy)

        # One-time (per TensorCore) fetch of the grid-resident operands + widening cast.
        # Guarded on the inner ("arbitrary") axis so each core initializes its own scratch
        # under megacore sharding of the outer ("parallel") axis.
        @pl.when(pl.program_id(1) == 0)
        def _init():
            img_cp = pltpu.make_async_copy(x_hbm, byte_buf, sems.at[0])
            wwt_cp = pltpu.make_async_copy(wwt_hbm, wwt_vmem, sems.at[1])
            img_cp.start()
            wwt_cp.start()
            img_cp.wait()
            # Widen i8 -> f32 once, in bounded row chunks (caps the i32/f32 temporaries).
            # `& 0xFF` recovers the uint8 value from the int8 bitcast view.
            for r0 in range(0, src_h, cast_chunk):
                rows = min(cast_chunk, src_h - r0)
                img_f32[pl.ds(r0, rows), :] = (
                    (byte_buf[pl.ds(r0, rows), :].astype(jnp.int32) & 0xFF)
                    .astype(jnp.float32))
            wwt_cp.wait()

        # Vertical bicubic pass for all channels at once: one MXU matmul with N = C*Wpad
        # (fills the MXU even for narrow images).  ToTensor's 1/255 is folded into wh.
        tmp = jnp.dot(wh_ref[...], img_f32[...],
                      preferred_element_type=jnp.float32)            # (bt, C*Wpad)

        wwt = wwt_vmem[...]
        for c in range(n_channels):                      # output channel c (RGB order)
            src_c = n_channels - 1 - c                   # BGR -> RGB flip via slab choice
            slab = tmp[:, src_c * wpad:(src_c + 1) * wpad]            # lane-aligned view
            out = jnp.dot(slab, wwt, preferred_element_type=jnp.float32)   # (bt, tWpad)
            # Fused Normalize: (x - mean)/std == x*scale + bias (host constants).
            o_ref[c] = (out * scale[c] + bias[c]).astype(o_ref.dtype)

    return kernel


def dinov2_preprocess(x_hwc_u8, target_h: int, target_w: int,
                      out_dtype=jnp.float32, row_block: int = 256):
    """DINOV2 preprocessing. x_hwc_u8: (H, W, 3) uint8 BGR image.
    Returns (1, 3, target_h, target_w) out_dtype (NCHW, matching PyTorch)."""
    H, W, C = x_hwc_u8.shape
    assert C == 3

    wpad = _round_up(W, 128)            # lane-aligned channel slabs
    tw_pad = _round_up(target_w, 128)   # lane-dense output stores
    bt, n_outer, n_inner = _pick_row_tiling(target_h, row_block)
    n_tiles = n_outer * n_inner

    # Byte-wide layout change only (no f32 copy in HBM):
    # (H, W, C) -> (H, C, Wpad) channel slabs along lanes -> (H, C*Wpad), int8 bitcast view.
    x_chw = jnp.transpose(x_hwc_u8, (0, 2, 1))                        # (H, C, W) uint8
    if wpad != W:
        x_chw = jnp.pad(x_chw, ((0, 0), (0, 0), (0, wpad - W)))
    x_stacked = x_chw.reshape(H, C * wpad).view(jnp.int8)

    # Host-side constant folding (weight-matrix zero padding is exact).
    wh = np.zeros((n_tiles * bt, H), dtype=np.float32)
    wh[:target_h] = _bicubic_matrix(H, target_h) * np.float32(1.0 / 255.0)
    wwt = np.zeros((wpad, tw_pad), dtype=np.float32)
    wwt[:W, :target_w] = _bicubic_matrix(W, target_w).T
    scale = tuple(float(v) for v in (1.0 / _STD_RGB))                 # fused Normalize
    bias = tuple(float(v) for v in (-_MEAN_RGB / _STD_RGB))

    cast_chunk = int(min(_round_up(H, 32), 256))

    # VMEM budget: resident scratches + pipelined wh/output blocks (+50% margin), capped
    # generation-aware at ~3/4 of physical VMEM (v7x: ~48 MiB, v5e/v6e: ~96 MiB).
    est = (H * C * wpad                       # byte image scratch (single copy)
           + H * C * wpad * 4                 # widened f32 image scratch
           + cast_chunk * C * wpad * 8        # transient i32/f32 widening temporaries
           + wpad * tw_pad * 4                # wwt scratch (single copy)
           + 2 * bt * _round_up(H, 128) * 4   # wh row tile (double-buffered)
           + 2 * C * bt * tw_pad * 4          # output tile (double-buffered)
           + bt * C * wpad * 4                # vertical-pass intermediate
           + C * bt * tw_pad * 4)             # horizontal-pass results
    try:
        vmem_cap = int(pltpu.get_tpu_info().vmem_capacity_bytes)
    except Exception:
        vmem_cap = 64 * 1024 * 1024
    vmem_limit = int(min(max(est + est // 2, 32 * 1024 * 1024),
                         max(32 * 1024 * 1024, (vmem_cap * 3) // 4)))
    # TODO(synk): for very large canonical images (>~2k x 2k) band the INPUT rows per
    # output-row tile (scalar-prefetched per-tile row offsets + shifted wh blocks) so the
    # resident image scratch also fits v7x's 64 MiB VMEM.

    kernel = _make_preproc_kernel(H, wpad, C, cast_chunk, scale, bias)
    out_padded = pl.pallas_call(
        kernel,
        out_shape=jax.ShapeDtypeStruct((C, target_h, tw_pad), out_dtype),
        grid=(n_outer, n_inner),
        in_specs=[
            pl.BlockSpec(memory_space=pl.ANY),                          # byte image: manual DMA, single copy
            pl.BlockSpec(memory_space=pl.ANY),                          # horizontal weights: manual DMA, single copy
            pl.BlockSpec((bt, H), lambda i, j: (i * n_inner + j, 0)),   # vertical weights row tile (pipelined)
        ],
        out_specs=pl.BlockSpec((C, bt, tw_pad),
                               lambda i, j: (0, i * n_inner + j, 0)),
        scratch_shapes=[
            pltpu.VMEM((H, C * wpad), jnp.float32),    # persistent widened image
            pltpu.VMEM((wpad, tw_pad), jnp.float32),   # resident horizontal weights
            pltpu.VMEM((H, C * wpad), jnp.int8),       # byte-image DMA landing buffer
            pltpu.SemaphoreType.DMA((2,)),
        ],
        compiler_params=pltpu.CompilerParams(
            dimension_semantics=("parallel", "arbitrary"),
            vmem_limit_bytes=vmem_limit,
        ),
    )(x_stacked, jnp.asarray(wwt), jnp.asarray(wh))

    # Drop lane padding (no-op when target_w % 128 == 0), add the batch dim (AddBatchDim).
    # TODO(synk): skip this slice (and/or emit bf16) if the downstream FM accepts the
    # lane-padded width — it costs an extra HBM read+write of the output done by XLA.
    return out_padded[:, :, :target_w][None]


def _reference(x_u8, target_h, target_w):
    """Pure-JAX f32 reference of the same PyTorch math (unfused form)."""
    H, W, _ = x_u8.shape
    wh = jnp.asarray(_bicubic_matrix(H, target_h))
    ww = jnp.asarray(_bicubic_matrix(W, target_w))
    mean = jnp.asarray(_MEAN_RGB)[:, None, None]
    std = jnp.asarray(_STD_RGB)[:, None, None]
    x_chw = jnp.transpose(x_u8, (2, 0, 1)).astype(jnp.float32) / 255.0
    x_rgb = x_chw[::-1]                                                # BGR -> RGB
    resized = jnp.einsum("oh,chw,pw->cop", wh, x_rgb, ww)
    return ((resized - mean) / std)[None]


if __name__ == "__main__":
    key = jax.random.PRNGKey(0)
    k1, k2, k3 = jax.random.split(key, 3)

    # Case 1: small canonical (16x16) -> 32x32 upsample (2-way even tile split, padded lanes).
    x1 = jax.random.randint(k1, (16, 16, 3), 0, 256, dtype=jnp.int32).astype(jnp.uint8)
    out1 = jax.block_until_ready(dinov2_preprocess(x1, 32, 32))
    assert out1.shape == (1, 3, 32, 32)
    np.testing.assert_allclose(np.asarray(out1), np.asarray(_reference(x1, 32, 32)),
                               rtol=1e-4, atol=1e-4)

    # Case 2: mixed up/down-sample with non-128 widths (24x40 -> 144x48).
    x2 = jax.random.randint(k2, (24, 40, 3), 0, 256, dtype=jnp.int32).astype(jnp.uint8)
    out2 = jax.block_until_ready(dinov2_preprocess(x2, 144, 48))
    assert out2.shape == (1, 3, 144, 48)
    np.testing.assert_allclose(np.asarray(out2), np.asarray(_reference(x2, 144, 48)),
                               rtol=1e-4, atol=1e-4)

    # Case 3: multi-step inner grid axis + ragged last row tile (56x72 -> 190x70, row_block=48);
    # exercises the hoisted one-time DMA+cast (program_id(1) == 0) with n_inner > 1.
    x3 = jax.random.randint(k3, (56, 72, 3), 0, 256, dtype=jnp.int32).astype(jnp.uint8)
    out3 = jax.block_until_ready(dinov2_preprocess(x3, 190, 70, row_block=48))
    assert out3.shape == (1, 3, 190, 70)
    np.testing.assert_allclose(np.asarray(out3), np.asarray(_reference(x3, 190, 70)),
                               rtol=1e-4, atol=1e-4)

    print("KERNEL_OK")
</pallas_src>

<mosaic_0001>
module attributes {stable_mosaic.version = 11 : i64} {
  func.func @kernel(%arg0: i32, %arg1: i32, %arg2: memref<16x384xi8, #tpu.memory_space<any>>, %arg3: memref<128x128xf32, #tpu.memory_space<any>>, %arg4: memref<16x16xf32, #tpu.memory_space<vmem>>, %arg5: memref<3x16x128xf32, #tpu.memory_space<vmem>>, %arg6: memref<16x384xf32, #tpu.memory_space<vmem>>, %arg7: memref<128x128xf32, #tpu.memory_space<vmem>>, %arg8: memref<16x384xi8, #tpu.memory_space<vmem>>, %arg9: memref<2x!tpu.dma_semaphore, #tpu.memory_space<semaphore_mem>>) attributes {dimension_semantics = [#tpu.dimension_semantics<parallel>, #tpu.dimension_semantics<arbitrary>], iteration_bounds = array<i64: 2, 1>, scalar_prefetch = 0 : i64, scratch_operands = 4 : i64, tpu.core_type = #tpu.core_type<tc>, window_params = [{}, {}, {transform_indices = @transform_2, window_bounds = array<i64: 16, 16>}, {transform_indices = @transform_3, window_bounds = array<i64: 3, 16, 128>}]} {
    %c0_i32 = arith.constant 0 : i32
    %0 = arith.cmpi eq, %arg1, %c0_i32 : i32
    %1 = arith.extui %0 : i1 to i32
    %c0_i32_0 = arith.constant 0 : i32
    %2 = arith.cmpi ne, %1, %c0_i32_0 : i32
    scf.if %2 {
      %c0_i32_22 = arith.constant 0 : i32
      %34 = tpu.memref_slice %arg9[%c0_i32_22] : memref<2x!tpu.dma_semaphore, #tpu.memory_space<semaphore_mem>> -> memref<1x!tpu.dma_semaphore, #tpu.memory_space<semaphore_mem>>
      %35 = tpu.memref_squeeze %34 : memref<1x!tpu.dma_semaphore, #tpu.memory_space<semaphore_mem>> -> memref<!tpu.dma_semaphore, #tpu.memory_space<semaphore_mem>>
      tpu.enqueue_dma source(%arg2 : memref<16x384xi8, #tpu.memory_space<any>>) target(%arg8 : memref<16x384xi8, #tpu.memory_space<vmem>>) target_semaphore(%35 : memref<!tpu.dma_semaphore, #tpu.memory_space<semaphore_mem>>)
      %c1_i32 = arith.constant 1 : i32
      %36 = tpu.memref_slice %arg9[%c1_i32] : memref<2x!tpu.dma_semaphore, #tpu.memory_space<semaphore_mem>> -> memref<1x!tpu.dma_semaphore, #tpu.memory_space<semaphore_mem>>
      %37 = tpu.memref_squeeze %36 : memref<1x!tpu.dma_semaphore, #tpu.memory_space<semaphore_mem>> -> memref<!tpu.dma_semaphore, #tpu.memory_space<semaphore_mem>>
      tpu.enqueue_dma source(%arg3 : memref<128x128xf32, #tpu.memory_space<any>>) target(%arg7 : memref<128x128xf32, #tpu.memory_space<vmem>>) target_semaphore(%37 : memref<!tpu.dma_semaphore, #tpu.memory_space<semaphore_mem>>)
      %c0_i32_23 = arith.constant 0 : i32
      %38 = tpu.memref_slice %arg9[%c0_i32_23] : memref<2x!tpu.dma_semaphore, #tpu.memory_space<semaphore_mem>> -> memref<1x!tpu.dma_semaphore, #tpu.memory_space<semaphore_mem>>
      %39 = tpu.memref_squeeze %38 : memref<1x!tpu.dma_semaphore, #tpu.memory_space<semaphore_mem>> -> memref<!tpu.dma_semaphore, #tpu.memory_space<semaphore_mem>>
      tpu.wait_dma2 semaphore(%39 : memref<!tpu.dma_semaphore, #tpu.memory_space<semaphore_mem>>) src(%arg2 : memref<16x384xi8, #tpu.memory_space<any>>) dst(%arg8 : memref<16x384xi8, #tpu.memory_space<vmem>>)
      %c0_24 = arith.constant 0 : index
      %c0_25 = arith.constant 0 : index
      %40 = vector.load %arg8[%c0_24, %c0_25] : memref<16x384xi8, #tpu.memory_space<vmem>>, vector<16x384xi8>
      %41 = arith.extsi %40 : vector<16x384xi8> to vector<16x384xi32>
      %c255_i32 = arith.constant 255 : i32
      %42 = vector.broadcast %c255_i32 : i32 to vector<16x384xi32>
      %43 = arith.andi %41, %42 : vector<16x384xi32>
      %44 = arith.sitofp %43 : vector<16x384xi32> to vector<16x384xf32>
      %c0_26 = arith.constant 0 : index
      %c0_27 = arith.constant 0 : index
      %45 = vector.load %arg6[%c0_26, %c0_27] : memref<16x384xf32, #tpu.memory_space<vmem>>, vector<16x384xf32>
      tpu.vector_store %arg6[%c0_26, %c0_27], %44 {strides = array<i32>} : memref<16x384xf32, #tpu.memory_space<vmem>>, vector<16x384xf32>,
      %c1_i32_28 = arith.constant 1 : i32
      %46 = tpu.memref_slice %arg9[%c1_i32_28] : memref<2x!tpu.dma_semaphore, #tpu.memory_space<semaphore_mem>> -> memref<1x!tpu.dma_semaphore, #tpu.memory_space<semaphore_mem>>
      %47 = tpu.memref_squeeze %46 : memref<1x!tpu.dma_semaphore, #tpu.memory_space<semaphore_mem>> -> memref<!tpu.dma_semaphore, #tpu.memory_space<semaphore_mem>>
      tpu.wait_dma2 semaphore(%47 : memref<!tpu.dma_semaphore, #tpu.memory_space<semaphore_mem>>) src(%arg3 : memref<128x128xf32, #tpu.memory_space<any>>) dst(%arg7 : memref<128x128xf32, #tpu.memory_space<vmem>>)
    } else {
    }
    %c0 = arith.constant 0 : index
    %c0_1 = arith.constant 0 : index
    %3 = vector.load %arg4[%c0, %c0_1] : memref<16x16xf32, #tpu.memory_space<vmem>>, vector<16x16xf32>
    %c0_2 = arith.constant 0 : index
    %c0_3 = arith.constant 0 : index
    %4 = vector.load %arg6[%c0_2, %c0_3] : memref<16x384xf32, #tpu.memory_space<vmem>>, vector<16x384xf32>
    %cst = arith.constant dense<0.000000e+00> : vector<16x384xf32>
    %5 = tpu.matmul %3, %4, %cst {dimension_numbers = #tpu.dot_dimension_numbers<[1], [0], [0], [1], [0, 0, 1, 1], [], []>} : vector<16x16xf32>, vector<16x384xf32>, vector<16x384xf32> -> vector<16x384xf32>
    %c0_4 = arith.constant 0 : index
    %c0_5 = arith.constant 0 : index
    %6 = vector.load %arg7[%c0_4, %c0_5] : memref<128x128xf32, #tpu.memory_space<vmem>>, vector<128x128xf32>
    %7 = vector.extract_strided_slice %5 {offsets = [0, 256], sizes = [16, 128], strides = [1, 1]} : vector<16x384xf32> to vector<16x128xf32>
    %cst_6 = arith.constant dense<0.000000e+00> : vector<16x128xf32>
    %8 = tpu.matmul %7, %6, %cst_6 {dimension_numbers = #tpu.dot_dimension_numbers<[1], [0], [0], [1], [0, 0, 1, 1], [], []>} : vector<16x128xf32>, vector<128x128xf32>, vector<16x128xf32> -> vector<16x128xf32>
    %cst_7 = arith.constant 4.36681223 : f32
    %9 = vector.broadcast %cst_7 : f32 to vector<16x128xf32>
    %10 = arith.mulf %8, %9 : vector<16x128xf32>
    %cst_8 = arith.constant -2.11790395 : f32
    %11 = vector.broadcast %cst_8 : f32 to vector<16x128xf32>
    %12 = arith.addf %10, %11 : vector<16x128xf32>
    %c0_9 = arith.constant 0 : index
    %c0_10 = arith.constant 0 : index
    %c0_11 = arith.constant 0 : index
    %13 = vector.load %arg5[%c0_9, %c0_10, %c0_11] : memref<3x16x128xf32, #tpu.memory_space<vmem>>, vector<1x16x128xf32>
    %14 = vector.shape_cast %13 : vector<1x16x128xf32> to vector<16x128xf32>
    %15 = vector.shape_cast %12 : vector<16x128xf32> to vector<1x16x128xf32>
    tpu.vector_store %arg5[%c0_9, %c0_10, %c0_11], %15 {strides = array<i32>} : memref<3x16x128xf32, #tpu.memory_space<vmem>>, vector<1x16x128xf32>,
    %16 = vector.extract_strided_slice %5 {offsets = [0, 128], sizes = [16, 128], strides = [1, 1]} : vector<16x384xf32> to vector<16x128xf32>
    %cst_12 = arith.constant dense<0.000000e+00> : vector<16x128xf32>
    %17 = tpu.matmul %16, %6, %cst_12 {dimension_numbers = #tpu.dot_dimension_numbers<[1], [0], [0], [1], [0, 0, 1, 1], [], []>} : vector<16x128xf32>, vector<128x128xf32>, vector<16x128xf32> -> vector<16x128xf32>
    %cst_13 = arith.constant 4.46428537 : f32
    %18 = vector.broadcast %cst_13 : f32 to vector<16x128xf32>
    %19 = arith.mulf %17, %18 : vector<16x128xf32>
    %cst_14 = arith.constant -2.03571415 : f32
    %20 = vector.broadcast %cst_14 : f32 to vector<16x128xf32>
    %21 = arith.addf %19, %20 : vector<16x128xf32>
    %c1 = arith.constant 1 : index
    %c0_15 = arith.constant 0 : index
    %c0_16 = arith.constant 0 : index
    %22 = vector.load %arg5[%c1, %c0_15, %c0_16] : memref<3x16x128xf32, #tpu.memory_space<vmem>>, vector<1x16x128xf32>
    %23 = vector.shape_cast %22 : vector<1x16x128xf32> to vector<16x128xf32>
    %24 = vector.shape_cast %21 : vector<16x128xf32> to vector<1x16x128xf32>
    tpu.vector_store %arg5[%c1, %c0_15, %c0_16], %24 {strides = array<i32>} : memref<3x16x128xf32, #tpu.memory_space<vmem>>, vector<1x16x128xf32>,
    %25 = vector.extract_strided_slice %5 {offsets = [0, 0], sizes = [16, 128], strides = [1, 1]} : vector<16x384xf32> to vector<16x128xf32>
    %cst_17 = arith.constant dense<0.000000e+00> : vector<16x128xf32>
    %26 = tpu.matmul %25, %6, %cst_17 {dimension_numbers = #tpu.dot_dimension_numbers<[1], [0], [0], [1], [0, 0, 1, 1], [], []>} : vector<16x128xf32>, vector<128x128xf32>, vector<16x128xf32> -> vector<16x128xf32>
    %cst_18 = arith.constant 4.44444466 : f32
    %27 = vector.broadcast %cst_18 : f32 to vector<16x128xf32>
    %28 = arith.mulf %26, %27 : vector<16x128xf32>
    %cst_19 = arith.constant -1.80444443 : f32
    %29 = vector.broadcast %cst_19 : f32 to vector<16x128xf32>
    %30 = arith.addf %28, %29 : vector<16x128xf32>
    %c2 = arith.constant 2 : index
    %c0_20 = arith.constant 0 : index
    %c0_21 = arith.constant 0 : index
    %31 = vector.load %arg5[%c2, %c0_20, %c0_21] : memref<3x16x128xf32, #tpu.memory_space<vmem>>, vector<1x16x128xf32>
    %32 = vector.shape_cast %31 : vector<1x16x128xf32> to vector<16x128xf32>
    %33 = vector.shape_cast %30 : vector<16x128xf32> to vector<1x16x128xf32>
    tpu.vector_store %arg5[%c2, %c0_20, %c0_21], %33 {strides = array<i32>} : memref<3x16x128xf32, #tpu.memory_space<vmem>>, vector<1x16x128xf32>,
    return
  }
  func.func @transform_2(%arg0: i32, %arg1: i32) -> (i32, i32) {
    %c1_i32 = arith.constant 1 : i32
    %0 = arith.muli %arg0, %c1_i32 : i32
    %1 = arith.addi %0, %arg1 : i32
    %c0_i32 = arith.constant 0 : i32
    %c0_i32_0 = arith.constant 0 : i32
    return %1, %c0_i32 : i32, i32
  }
  func.func @transform_3(%arg0: i32, %arg1: i32) -> (i32, i32, i32) {
    %c1_i32 = arith.constant 1 : i32
    %0 = arith.muli %arg0, %c1_i32 : i32
    %1 = arith.addi %0, %arg1 : i32
    %c0_i32 = arith.constant 0 : i32
    %c0_i32_0 = arith.constant 0 : i32
    %c0_i32_1 = arith.constant 0 : i32
    return %c0_i32, %1, %c0_i32_0 : i32, i32, i32
  }
}

</mosaic_0001>

<bundles_post_ra>
// kernel: tpu_custom_call.1
= control target key start
LH: loop header
LB: loop body
LE: loop exit
PB: predicated region body
PF: predicated region fallthrough
CT: control target
= control target key end

     0   :  { %8 = vsyncpa [#allocation7], 0  ;;  %s1406_s0 = inlined_call_operand.vmem [shape: s8[16,384], index: 0, kind: input, shape index: {}]   ;;  %s1407_s1 = inlined_call_operand.hbm [shape: f32[128,128], index: 1, kind: input, shape index: {}]   ;;  %s1408_s2 = inlined_call_operand.vmem [shape: f32[32,16], index: 2, kind: input, shape index: {}]   ;;  %s1409_s3 = inlined_call_operand.hbm [shape: f32[3,32,128], index: 3, kind: output, shape index: {}]  }
   0x1   :  { %10 = vsyncpa [#allocation7 + $0x1], 0  ;;  %s1180_s12 = smov 0   ;;  %s1182_s13 = smov 0  }
   0x2   :  { %s1184_s14 = smov 0   ;;  %s1186_s15 = smov 0  }
   0x3   :  { %s1188_s16 = smov 0   ;;  %s1190_s17 = smov 0  }
   0x4 LB: > { %s811_s18 = sadd.s32 4294967295, %s1149_s17   ;;  %s812_s19 = sadd.s32 4294967294, %s1149_s17   ;;  %s1149_s17 = sphi %s1190_s17, %s16_s17   ;;  %s1145_s16 = sphi %s1188_s16, %s1416_s16   ;;  %s1141_s15 = sphi %s1186_s15, %s1415_s15   ;;  %s1137_s14 = sphi %s1184_s14, %s1414_s14   ;;  %s1133_s13 = sphi %s1182_s13, %s1413_s13   ;;  %s1129_s12 = sphi %s1180_s12, %s1412_s12  }
   0x5   : > { %s28_s20 = sadd.s32 1, %s1145_s16  ;;  %s65_s21 = sadd.s32 1, %s1137_s14 }
   0x6   : > { %p30_p0 = scmp.ge.s32.totalorder %s28_s20, 2  ;;  %p75_p1 = scmp.ne.s32.totalorder %s1137_s14, %s1133_s13 }
   0x7   : > { %p76_p2 = scmp.eq.s32.totalorder %s811_s18, 1  ;;  %p81_p3 = scmp.ne.s32.totalorder %s1133_s13, %s1129_s12 }
   0x8   : > { %s1418_s20 = smov (%p30_p0, %s28_s20), 0  ;;  %p82_p5 = scmp.eq.s32.totalorder %s812_s19, 1 }
   0x9   : > { %p1220_p4 = por %p76_p2, %p75_p1  ;;  %s62_s23 = ssub.s32 %s1145_s16, %s1418_s20 }
   0xa   : > { %p815_p6 = scmp.ge.s32.totalorder %s1149_s17, 1  ;;  %p63_p7 = scmp.eq.s32.totalorder %s62_s23, 0 }
   0xb   : > { %p1227_p8 = por %p82_p5, %p81_p3  ;;  %p111_p9 = scmp.lt.s32.totalorder %s1149_s17, 3 }
   0xc   : > { %s1233_s25 = scalar_select %p63_p7, %s1137_s14, %s65_s21  }
   0xd   : > { %p112_p10 = pnand %p815_p6, %p111_p9 }
   0xe   : > { %s129_s26 = sand.u32 (!%p112_p10), 1, %s1133_s13   ;;  %s816_s27 = sshll.u32 (!%p112_p10), %s1141_s15, 1 }
   0xf   : > { %115 = sbr.rel (%p112_p10) target bundleno = 492 (0x1ec), region = 24  ;;  %p134_p11 = scmp.lt.s32.totalorder (!%p112_p10), %s816_s27, 3 }
  0x10   : > { %s1004_s5 = smul.u32 (!%p112_p10), 48, %s129_s26 }
  0x12   : > { %s1250_s10 = scalar_lea.vmem (!%p112_p10), [#allocation6], %s1004_s5 }
  0x14   : > { %v184_v0 = vld [vmem:[%s1406_s0] sm:$0xff]  ;;  %v818_v1 = vld [vmem:[%s1406_s0 + $0x8] sm:$0xf]  ;;  %s1420_s27 = smov (!%p134_p11, %s816_s27), 3 }
  0x15   : > { %185 = vst [vmem:[#allocation4] sm:$0xff] %v184_v0  ;;  %197 = vst [vmem:[#allocation4 + $0x8] sm:$0xf] %v818_v1  ;;  %s817_s6 = sshll.u32 %s1420_s27, 3 }
  0x16   : > { %s1248_s9 = scalar_lea.vmem %s1408_s2, %s817_s6 }
  0x17   : > { %201 = vsyncadd [#allocation5], 192  ;;  %s1151_s11 = smov [#allocation3]  }
  0x18   : > { %s210_s18 = sshll.u32 %s1151_s11, 4  ;;  %s211_s18 = int_to_ptr.vmem [resolvable:$true] %s210_s18 }
  0x19   : > { %s1083_s19 = scalar_lea.vmem %s211_s18, 2048  ;;  %p1088_p13 = scmp.lt.s32.totalorder %s211_s18, %s211_s18 }
  0x1a   : > { %p1084_p12 = scmp.ne.s32.totalorder %s211_s18, %s1083_s19  ;;  %p1089_p0 = scmp.lt.s32.totalorder %s1083_s19, %s1083_s19 }
  0x1c   : > { %p1090_p1 = por %p1089_p0, %p1088_p13 }
  0x1e   : > { %p1091_p2 = pnand %p1090_p1, %p1084_p12 }
  0x20   : > { %1094 = shalt.err (!%p1091_p2)  }
  0x21   : > { %213 = dma.hbm_to_vmem [thread:$0]  %s1407_s1, 2048, %s211_s18, [#allocation5 + $0x1] }
  0x22   : > { %1119 = dma.done.wait [#allocation5], 192 }
  0x23   : > { %1120 = vsyncadd [#allocation5], 4294967104  ;;  %v218_v2 = vld [vmem:[#allocation4] sm:$0x3f]  ;;  %v219_v3 = vld [vmem:[#allocation4 + $0x6] sm:$0x3f] }
  0x24   : > { %v220_v4 = vunpack.c.0.s8 %v218_v2  ;;  %v221_v5 = vunpack.c.1.s8 %v218_v2  ;;  %v222_v6 = vunpack.c.2.s8 %v218_v2  ;;  %v223_v7 = vunpack.c.0.s8 %v219_v3 }
  0x25   : > { %v224_v8 = vunpack.c.1.s8 %v219_v3  ;;  %v225_v9 = vunpack.c.2.s8 %v219_v3 }
  0x26   : > { %v226_v10 = vand.u32 255, %v220_v4  ;;  %v227_v11 = vand.u32 255, %v221_v5  ;;  %v228_v12 = vand.u32 255, %v222_v6  ;;  %v229_v13 = vand.u32 255, %v223_v7 }
  0x27   : > { %v230_v14 = vand.u32 255, %v224_v8  ;;  %v231_v15 = vand.u32 255, %v225_v9 }
  0x28   : > { %v232_v16 = vcvt.s32.f32 %v226_v10  ;;  %v233_v17 = vcvt.s32.f32 %v227_v11  ;;  %v234_v18 = vcvt.s32.f32 %v228_v12  ;;  %v235_v19 = vcvt.s32.f32 %v229_v13 }
  0x29   : > { %v236_v20 = vcvt.s32.f32 %v230_v14  ;;  %v237_v21 = vcvt.s32.f32 %v231_v15 }
  0x2a   : > { %1121 = dma.done.wait [#allocation5 + $0x1], 2048 }
  0x2b   : > { %1122 = vsyncadd [#allocation5 + $0x1], 4294965248  ;;  %290 = vmatprep.subr.mxu1 %v236_v20  ;;  %v1152_v22 = vmov 0.0   ;;  %vm255_vm0 = vcmask 130048   ;;  %v247_v23 = vld [vmem:[%s1248_s9] sm:$0xff]  ;;  %v1256_v24 = vld [vmem:[#allocation3 + $0x78] sm:$0xff] }
  0x2c   : > { %291 = vmatpush1.msra.mxu1 %v235_v19  ;;  %326 = vmatprep.mubr.f32.mxu1 %v1152_v22  ;;  %v248_v25 = vld [vmem:[%s1248_s9 + $0x8] sm:$0xff]  ;;  %v1261_v26 = vld [vmem:[#allocation3 + $0x70] sm:$0xff]  ;;  %v1272_v28 = vld [vmem:[#allocation3 + $0x60] sm:$0xff]  ;;  %s676_s27 = scalar_lea.sflag [#allocation7], %s129_s26 }
  0x2d   : > { %292 = vmatprep.subr.mxu1 %v233_v17  ;;  %899 = vmatprep.subr.mxu0 %v1256_v24  ;;  %v1268_v27 = vld [vmem:[#allocation3 + $0x68] sm:$0xff]  ;;  %v1278_v29 = vld [vmem:[#allocation3 + $0x58] sm:$0xff]  ;;  %v1284_v30 = vld [vmem:[#allocation3 + $0x50] sm:$0xff] }
  0x2e   : > { %293 = vmatpush1.msra.mxu1 %v232_v16  ;;  %900 = vmatpush3.msra.mxu0 %v1256_v24  ;;  %v1290_v31 = vld [vmem:[#allocation3 + $0x48] sm:$0xff]  ;;  %v1296_v32 = vld [vmem:[#allocation3 + $0x40] sm:$0xff]  ;;  %v1302_v33 = vld [vmem:[#allocation3 + $0x38] sm:$0xff] }
  0x2f   : > { %892 = vmatprep.subr.mxu1 %v237_v21  ;;  %819 = vmatmul.mubr.msk.f32.vlgmr.msra.gmra.mxu1 %vm255_vm0, %v247_v23  ;;  %v1308_v34 = vld [vmem:[#allocation3 + $0x30] sm:$0xff]  ;;  %v1314_v35 = vld [vmem:[#allocation3 + $0x28] sm:$0xff]  ;;  %v1320_v36 = vld [vmem:[#allocation3 + $0x20] sm:$0xff] }
  0x30   : > { %893 = vmatpush3.msra.mxu1 %v237_v21  ;;  %332 = vmatprep.mubr.f32.mxu1 %v1152_v22  ;;  %v417_v37 = vld [vmem:[#allocation3 + $0x18] sm:$0xff]  ;;  %v416_v38 = vld [vmem:[#allocation3 + $0x10] sm:$0xff]  ;;  %v415_v39 = vld [vmem:[#allocation3 + $0x8] sm:$0xff] }
  0x31   : > { %894 = vmatprep.subr.mxu1 %v234_v18  ;;  %901 = vmatprep.subr.mxu0 %v1261_v26  ;;  %v414_v40 = vld [vmem:[#allocation3] sm:$0xff] }
  0x32   : > { %895 = vmatpush3.msra.mxu1 %v234_v18  ;;  %902 = vmatpush3.msra.mxu0 %v1261_v26 }
  0x33   : > { %820 = vmatmul.mubr.msk.f32.gmra.mxu1 %vm255_vm0, %v248_v25  ;;  %934 = vmatprep.subr.mxu1 %v1256_v24 }
  0x34   : > { %896 = vmatprep.mubr.msk.f32.mxu1 %vm255_vm0, %v247_v23  ;;  %903 = vmatprep.subr.mxu0 %v1268_v27 }
  0x35   : > { %904 = vmatpush3.msra.mxu0 %v1268_v27 }
  0x36   : > { %905 = vmatprep.subr.mxu0 %v1272_v28 }
  0x37   : > { %897 = vmatmul.mubr.msk.f32.vlgmr.msra.gmra.mxu1 %vm255_vm0, %v248_v25  ;;  %906 = vmatpush3.msra.mxu0 %v1272_v28 }
  0x38   : > { %935 = vmatpush3.msra.mxu1 %v1256_v24  ;;  %907 = vmatprep.subr.mxu0 %v1278_v29 }
  0x39   : > { %936 = vmatprep.subr.mxu1 %v1261_v26  ;;  %908 = vmatpush3.msra.mxu0 %v1278_v29 }
  0x3a   : > { %937 = vmatpush3.msra.mxu1 %v1261_v26  ;;  %909 = vmatprep.subr.mxu0 %v1284_v30 }
  0x3b   : > { %938 = vmatprep.subr.mxu1 %v1268_v27  ;;  %910 = vmatpush3.msra.mxu0 %v1284_v30 }
  0x3c   : > { %939 = vmatpush3.msra.mxu1 %v1268_v27  ;;  %911 = vmatprep.subr.mxu0 %v1290_v31 }
  0x3d   : > { %940 = vmatprep.subr.mxu1 %v1272_v28  ;;  %912 = vmatpush3.msra.mxu0 %v1290_v31 }
  0x3e   : > { %941 = vmatpush3.msra.mxu1 %v1272_v28  ;;  %913 = vmatprep.subr.mxu0 %v1296_v32 }
  0x3f   : > { %942 = vmatprep.subr.mxu1 %v1278_v29  ;;  %914 = vmatpush3.msra.mxu0 %v1296_v32 }
  0x40   : > { %943 = vmatpush3.msra.mxu1 %v1278_v29  ;;  %915 = vmatprep.subr.mxu0 %v1302_v33 }
  0x41   : > { %944 = vmatprep.subr.mxu1 %v1284_v30  ;;  %916 = vmatpush3.msra.mxu0 %v1302_v33 }
  0x42   : > { %945 = vmatpush3.msra.mxu1 %v1284_v30  ;;  %917 = vmatprep.subr.mxu0 %v1308_v34 }
  0x43   : > { %946 = vmatprep.subr.mxu1 %v1290_v31  ;;  %918 = vmatpush3.msra.mxu0 %v1308_v34 }
  0x44   : > { %947 = vmatpush3.msra.mxu1 %v1290_v31  ;;  %919 = vmatprep.subr.mxu0 %v1314_v35 }
  0x45   : > { %948 = vmatprep.subr.mxu1 %v1296_v32  ;;  %920 = vmatpush3.msra.mxu0 %v1314_v35 }
  0x46   : > { %949 = vmatpush3.msra.mxu1 %v1296_v32  ;;  %921 = vmatprep.subr.mxu0 %v1320_v36 }
  0x47   : > { %950 = vmatprep.subr.mxu1 %v1302_v33  ;;  %922 = vmatpush3.msra.mxu0 %v1320_v36 }
  0x48   : > { %951 = vmatpush3.msra.mxu1 %v1302_v33  ;;  %923 = vmatprep.subr.mxu0 %v417_v37 }
  0x49   : > { %952 = vmatprep.subr.mxu1 %v1308_v34  ;;  %924 = vmatpush3.msra.mxu0 %v417_v37 }
  0x4a   : > { %953 = vmatpush3.msra.mxu1 %v1308_v34  ;;  %925 = vmatprep.subr.mxu0 %v416_v38 }
  0x4b   : > { %954 = vmatprep.subr.mxu1 %v1314_v35  ;;  %926 = vmatpush3.msra.mxu0 %v416_v38 }
  0x4c   : > { %955 = vmatpush3.msra.mxu1 %v1314_v35  ;;  %927 = vmatprep.subr.mxu0 %v415_v39 }
  0x4d   : > { %956 = vmatprep.subr.mxu1 %v1320_v36  ;;  %928 = vmatpush3.msra.mxu0 %v415_v39 }
  0x4e   : > { %957 = vmatpush3.msra.mxu1 %v1320_v36  ;;  %929 = vmatprep.subr.mxu0 %v414_v40 }
  0x4f   : > { %958 = vmatprep.subr.mxu1 %v417_v37  ;;  %930 = vmatpush3.msra.mxu0 %v414_v40 }
  0x50   : > { %959 = vmatpush3.msra.mxu1 %v417_v37  ;;  %969 = vmatprep.subr.mxu0 %v1256_v24 }
  0x51   : > { %960 = vmatprep.subr.mxu1 %v416_v38 }
  0x52   : > { %961 = vmatpush3.msra.mxu1 %v416_v38 }
  0x53   : > { %962 = vmatprep.subr.mxu1 %v415_v39 }
  0x54   : > { %963 = vmatpush3.msra.mxu1 %v415_v39 }
  0x55   : > { %964 = vmatprep.subr.mxu1 %v414_v40 }
  0x56   : > { %965 = vmatpush3.msra.mxu1 %v414_v40 }
  0xef   : > { %v328_v41 = vpop.f32.mrf.mxu1 }
  0xf1   : > { %v330_v42 = vpop.f32.mrf.mxu1 }
  0xf2   : > { %966 = vmatprep.mubr.f32.mxu1 %v330_v42 }
  0xf3   : > { %v334_v43 = vpop.f32.mrf.mxu1 }
  0xf5   : > { %v336_v44 = vpop.f32.mrf.mxu1 }
  0xf6   : > { %967 = vmatmul.mubr.f32.vlgmr.msra.gmra.mxu1 %v336_v44 }
  0xf7   : > { %v898_v45 = vpop.f32.mrf.mxu1 }
  0xf9   : > { %v405_v46 = vpop.f32.mrf.mxu1 }
  0xfa   : > { %931 = vmatprep.mubr.f32.mxu0 %v405_v46 }
  0xfb   : > { %932 = vmatmul.mubr.f32.vlgmr.msra.gmra.mxu0 %v898_v45 }
  0xfc   : > { %970 = vmatpush3.msra.mxu0 %v1256_v24  ;;  %1001 = vmatprep.mubr.f32.mxu0 %v328_v41 }
  0xfd   : > { %971 = vmatprep.subr.mxu0 %v1261_v26 }
  0xfe   : > { %972 = vmatpush3.msra.mxu0 %v1261_v26 }
  0xff   : > { %973 = vmatprep.subr.mxu0 %v1268_v27 }
 0x100   : > { %974 = vmatpush3.msra.mxu0 %v1268_v27 }
 0x101   : > { %975 = vmatprep.subr.mxu0 %v1272_v28 }
 0x102   : > { %976 = vmatpush3.msra.mxu0 %v1272_v28 }
 0x103   : > { %977 = vmatprep.subr.mxu0 %v1278_v29 }
 0x104   : > { %978 = vmatpush3.msra.mxu0 %v1278_v29 }
 0x105   : > { %979 = vmatprep.subr.mxu0 %v1284_v30 }
 0x106   : > { %980 = vmatpush3.msra.mxu0 %v1284_v30 }
 0x107   : > { %981 = vmatprep.subr.mxu0 %v1290_v31 }
 0x108   : > { %982 = vmatpush3.msra.mxu0 %v1290_v31 }
 0x109   : > { %983 = vmatprep.subr.mxu0 %v1296_v32 }
 0x10a   : > { %984 = vmatpush3.msra.mxu0 %v1296_v32 }
 0x10b   : > { %985 = vmatprep.subr.mxu0 %v1302_v33 }
 0x10c   : > { %986 = vmatpush3.msra.mxu0 %v1302_v33 }
 0x10d   : > { %987 = vmatprep.subr.mxu0 %v1308_v34 }
 0x10e   : > { %988 = vmatpush3.msra.mxu0 %v1308_v34 }
 0x10f   : > { %989 = vmatprep.subr.mxu0 %v1314_v35 }
 0x110   : > { %990 = vmatpush3.msra.mxu0 %v1314_v35 }
 0x111   : > { %991 = vmatprep.subr.mxu0 %v1320_v36 }
 0x112   : > { %992 = vmatpush3.msra.mxu0 %v1320_v36 }
 0x113   : > { %993 = vmatprep.subr.mxu0 %v417_v37 }
 0x114   : > { %994 = vmatpush3.msra.mxu0 %v417_v37 }
 0x115   : > { %995 = vmatprep.subr.mxu0 %v416_v38 }
 0x116   : > { %996 = vmatpush3.msra.mxu0 %v416_v38 }
 0x117   : > { %997 = vmatprep.subr.mxu0 %v415_v39 }
 0x118   : > { %998 = vmatpush3.msra.mxu0 %v415_v39 }
 0x119   : > { %999 = vmatprep.subr.mxu0 %v414_v40 }
 0x11a   : > { %1000 = vmatpush3.msra.mxu0 %v414_v40 }
 0x11b   : > { %1002 = vmatmul.mubr.f32.vlgmr.msra.gmra.mxu0 %v334_v43 }
 0x1b6   : > { %v968_v47 = vpop.f32.mrf.mxu1 }
 0x1b7   : > { %v587_v48 = vmul.f32 4.4642854, %v968_v47 }
 0x1b8   : > { %v577_v49 = vpop.f32.mrf.mxu1 }
 0x1b9   : > { %v589_v50 = vadd.f32 -2.0357141, %v587_v48  ;;  %v586_v51 = vmul.f32 4.4642854, %v577_v49 }
 0x1bb   : > { %824 = vst [vmem:[%s1250_s10 + $0x18] sm:$0xff] %v589_v50  ;;  %v588_v52 = vadd.f32 -2.0357141, %v586_v51  ;;  %v933_v53 = vpop.f32.mrf.mxu0 }
 0x1bc   : > { %v506_v54 = vmul.f32 4.366812, %v933_v53 }
 0x1bd   : > { %823 = vst [vmem:[%s1250_s10 + $0x10] sm:$0xff] %v588_v52  ;;  %v496_v55 = vpop.f32.mrf.mxu0 }
 0x1be   : > { %v508_v56 = vadd.f32 -2.117904, %v506_v54  ;;  %v505_v57 = vmul.f32 4.366812, %v496_v55 }
 0x1c0   : > { %510 = vst [vmem:[%s1250_s10 + $0x8] sm:$0xff] %v508_v56  ;;  %v507_v58 = vadd.f32 -2.117904, %v505_v57 }
 0x1c2   : > { %509 = vst [vmem:[%s1250_s10] sm:$0xff] %v507_v58 }
 0x1db   : > { %v1003_v59 = vpop.f32.mrf.mxu0 }
 0x1dc   : > { %v669_v60 = vmul.f32 4.4444447, %v1003_v59 }
 0x1dd   : > { %v659_v61 = vpop.f32.mrf.mxu0 }
 0x1de   : > { %v671_v62 = vadd.f32 -1.8044444, %v669_v60  ;;  %v668_v63 = vmul.f32 4.4444447, %v659_v61 }
 0x1e0   : > { %826 = vst [vmem:[%s1250_s10 + $0x28] sm:$0xff] %v671_v62  ;;  %v670_v0 = vadd.f32 -1.8044444, %v668_v63 }
 0x1e2   : > { %825 = vst [vmem:[%s1250_s10 + $0x20] sm:$0xff] %v670_v0 }
 0x1e3   : > { %s833_s28 = sshll.u32 %s1141_s15, 8  ;;  %s700_s29 = sshll.u32 %s1250_s10, 4  ;;  %s701_s29 = int_to_ptr.vmem [resolvable:$true] %s700_s29 }
 0x1e4   : > { %s689_s5 = scalar_lea.hbm %s1409_s3, %s833_s28  ;;  %s1153_s6 = smov 256  }
 0x1e5   : > { %1005 = sst [smem:[#allocation14]] (%p1220_p4), %s1153_s6  ;;  %s1154_s26 = smov 512  }
 0x1e6   : > { %1006 = sst [smem:[#allocation14 + $0x1]] (%p1220_p4), %s1154_s26  ;;  %s1155_s7 = smov 2  }
 0x1e7   : > { %1007 = sst [smem:[#allocation14 + $0x2]] (%p1220_p4), %s1155_s7  ;;  %s1156_s8 = smov 128  }
 0x1e8   : > { %1008 = sst [smem:[#allocation14 + $0x3]] (%p1220_p4), %s1156_s8  ;;  %s1157_s15 = smov 8  }
 0x1e9   : > { %1009 = sst [smem:[#allocation14 + $0x4]] (%p1220_p4), %s1156_s8  ;;  %s1158_s9 = smov 131072  }
 0x1ea   : > { %1010 = sst [smem:[#allocation14 + $0x5]] (%p1220_p4), %s1157_s15  ;;  %s1159_s10 = smov 0  }
 0x1eb   : > { %1011 = dma.general (%p1220_p4), %s701_s29, 768, %s689_s5, %s676_s27, %s1158_s9, [#allocation14], %s1159_s10, 0  }
 0x1ec PF: > { %p1017_p3 = scmp.ge.s32.totalorder %s1149_s17, 2  ;;  %s728_s11 = sand.u32 1, %s1129_s12  }
 0x1ed   : > { %s729_s18 = scalar_lea.sflag [#allocation7], %s728_s11 }
 0x1ee   : > { %p1014_p5 = pnand %p1017_p3, %p1227_p8 }
 0x1f0   : > { %p1015_p6 = pneg %p1014_p5 }
 0x1f2   : > { %1124 = dma.done.wait (%p1015_p6), %s729_s18, 768  }
 0x1f3   : > { %1126 = vsyncadd (%p1015_p6), %s729_s18, 4294966528  ;;  %s16_s17 = sadd.s32 1, %s1149_s17   ;;  %s1412_s12 = smov %s1133_s13 }
 0x1f4   : > { %p13_p7 = scmp.ge.s32.totalorder %s16_s17, 4   ;;  %s1413_s13 = smov %s1137_s14 }
 0x1f5   : > { %s1414_s14 = smov %s1233_s25  ;;  %s1415_s15 = smov %s1145_s16 }
 0x1f6   : > { %s1416_s16 = smov %s1418_s20  ;;  %15 = sbr.rel (!%p13_p7) target bundleno = 4 (0x4), region = 127 }
 0x1fb   :  { %734 = vsyncpa [#allocation7], 1 }
 0x1fc   :  { %736 = vsyncpa [#allocation7 + $0x1], 1 }
 0x1fd   :  { %737 = vsyncmov [#allocation5] }
 0x200   :  { %s738_s22 = vpop.sfrf %737 }
 0x201   :  { %p831_p4 = scmp.ne.s32.totalorder %s738_s22, 0 }
 0x203   :  { %742 = shalt.err (%p831_p4)  }
 0x204   :  { %744 = vsyncmov [#allocation5 + $0x1] }
 0x207   :  { %s745_s24 = vpop.sfrf %744 }
 0x208   :  { %p832_p8 = scmp.ne.s32.totalorder %s745_s24, 0 }
 0x20a   :  { %749 = shalt.err (%p832_p8)  }

</bundles_post_ra>
